<compile_context>
chip_gen: v6e
topology: v6e:2x2x1
jax: 0.10.0
libtpu: 0.0.40
codegen_flags: <defaults>
</compile_context>

<pallas_src>
import jax
import jax.numpy as jnp
from jax import lax
from jax.experimental import pallas as pl
from jax.experimental.pallas import tpu as pltpu

LN_EPS = 1e-12            # BERT LayerNorm default
INV_SQRT2 = 0.7071067811865476


def _round_up(x, m):
    return (x + m - 1) // m * m


def _full_spec(shape):
    nd = len(shape)
    return pl.BlockSpec(shape, lambda i, _nd=nd: (0,) * _nd)


# --------------------------------------------------------------------------- #
# Kernel 1: BertPredictionHeadTransform on the batched (video+text) rows,
#           plus the masked-frame row dot and the non-masked-frame matmul.
# --------------------------------------------------------------------------- #
def _transform_kernel(x_ref, tgt_ref, nmf_ref, dw_ref, db_ref, lg_ref, lb_ref,
                      h_ref, masked_ref, nm_ref):
    dims = (((1,), (1,)), ((), ()))              # contract last dims, no .T
    # Linear(H,H) + exact (erf) GELU + LayerNorm, all f32.
    y = lax.dot_general(x_ref[...], dw_ref[...], dims,
                        preferred_element_type=jnp.float32) + db_ref[...]
    y = 0.5 * y * (1.0 + lax.erf(y * INV_SQRT2))
    mu = jnp.mean(y, axis=-1, keepdims=True)
    var = jnp.mean((y - mu) * (y - mu), axis=-1, keepdims=True)
    h = ((y - mu) * lax.rsqrt(var + LN_EPS)) * lg_ref[...] + lb_ref[...]
    # masked_frame_logits = bmm(h.unsqueeze(1), tgt.unsqueeze(-1)) == row dot.
    masked_ref[...] = jnp.sum(h * tgt_ref[...], axis=-1, keepdims=True)
    # Similarity against non-masked frames: rows [0:Nv] are the video
    # non_masked_frame_logits, rows [Nv:Nv+Nt] are text_on_video_logits.
    nm_ref[...] = lax.dot_general(h, nmf_ref[...], dims,
                                  preferred_element_type=jnp.float32)
    # bf16 operands for the MXU projection (f32 accumulation happens there).
    h_ref[...] = h.astype(h_ref.dtype)


def _call_transform(x_pad, tgt_pad, nmf, dw, db, lg, lb):
    Np, H = x_pad.shape
    Nf = nmf.shape[0]
    ins = (x_pad, tgt_pad, nmf, dw, db, lg, lb)
    outs = (jax.ShapeDtypeStruct((Np, H), jnp.bfloat16),   # transformed rows
            jax.ShapeDtypeStruct((Np, 1), jnp.float32),    # masked-frame dots
            jax.ShapeDtypeStruct((Np, Nf), jnp.float32))   # non-masked logits
    return pl.pallas_call(
        _transform_kernel,
        out_shape=outs,
        grid_spec=pltpu.PrefetchScalarGridSpec(
            num_scalar_prefetch=0,
            grid=(1,),
            in_specs=[_full_spec(a.shape) for a in ins],
            out_specs=[_full_spec(s.shape) for s in outs],
        ),
        compiler_params=pltpu.CompilerParams(
            dimension_semantics=("arbitrary",)),
    )(*ins)


# --------------------------------------------------------------------------- #
# Kernel 2: fused vocab-tiled decoder projection for video + text rows.
#   One dot per tile, no branches, lane-dense padded output.
# --------------------------------------------------------------------------- #
def _project_kernel(h_ref, w_ref, out_ref):
    out_ref[...] = lax.dot_general(
        h_ref[...], w_ref[...], (((1,), (1,)), ((), ())),
        preferred_element_type=jnp.float32)


def _call_project(h_pad, w_pad, tile_v, vmem_limit_bytes):
    Np, H = h_pad.shape
    rp = w_pad.shape[0]
    grid = (rp // tile_v,)
    return pl.pallas_call(
        _project_kernel,
        out_shape=jax.ShapeDtypeStruct((Np, rp), jnp.float32),
        grid_spec=pltpu.PrefetchScalarGridSpec(
            num_scalar_prefetch=0,
            grid=grid,
            in_specs=[
                pl.BlockSpec((Np, H), lambda j: (0, 0)),     # resident rows
                pl.BlockSpec((tile_v, H), lambda j: (j, 0)), # streamed once
            ],
            out_specs=pl.BlockSpec((Np, tile_v), lambda j: (0, j)),
        ),
        compiler_params=pltpu.CompilerParams(
            dimension_semantics=("parallel",),   # vocab tiles independent
            vmem_limit_bytes=vmem_limit_bytes),
    )(h_pad, w_pad)


# --------------------------------------------------------------------------- #
# One-time parameter prep + per-generation tile selection.
# --------------------------------------------------------------------------- #
def _pick_tile_and_vmem(H, V, max_rows=256):
    try:
        vmem_cap = int(pltpu.get_tpu_info().vmem_capacity_bytes)
    except Exception:
        vmem_cap = 64 * 1024 * 1024              # conservative (v7x per-TC)
    vmem_limit = min(vmem_cap * 3 // 4, 96 * 1024 * 1024)
    tile_v = min(8192, _round_up(max(V, 128), 128))

    def _budget(t):
        # streamed weight (x2 buffers) + output (x2) + resident rows + slack
        return (2 * t * H * 2) + (2 * max_rows * t * 4) \
               + (2 * max_rows * H * 2) + (4 << 20)

    while tile_v > 256 and _budget(tile_v) > vmem_limit:
        tile_v //= 2
    return max(128, tile_v), vmem_limit


def prepare_mtm_params(params, *, max_rows=256):
    """Call ONCE at parameter-load time.

    Casts the decoder weight to bf16 and zero-pads it to a vocab-tile
    multiple so the forward pass never rebuilds / re-casts the big weight.
    """
    decw = params["decoder_w"]                   # (V, H)
    V, H = decw.shape
    tile_v, vmem_limit = _pick_tile_and_vmem(H, V, max_rows=max_rows)
    rp = _round_up(V, tile_v)
    decw_b = decw.astype(jnp.bfloat16)
    if rp > V:
        decw_b = jnp.concatenate(
            [decw_b, jnp.zeros((rp - V, H), jnp.bfloat16)], axis=0)
    return {
        "dense_w": params["dense_w"].astype(jnp.float32),        # (H, H)
        "dense_b": params["dense_b"].reshape(1, -1).astype(jnp.float32),
        "ln_g": params["ln_g"].reshape(1, -1).astype(jnp.float32),
        "ln_b": params["ln_b"].reshape(1, -1).astype(jnp.float32),
        "decoder_w_bf16_pad": decw_b,                            # (rp, H)
        "vocab_size": V,
        "hidden_size": H,
        "tile_v": tile_v,
        "vmem_limit_bytes": vmem_limit,
    }


# --------------------------------------------------------------------------- #
# MTMHead.forward
# --------------------------------------------------------------------------- #
def mtm_head_forward(prepared,
                     video_hidden_states=None,
                     target_video_hidden_states=None,
                     non_masked_frame_hidden_states=None,
                     text_hidden_states=None):
    """Returns (video_logits, text_logits), matching the PyTorch module."""
    if non_masked_frame_hidden_states is None:
        raise ValueError("non_masked_frame_hidden_states is required")
    have_video = video_hidden_states is not None
    have_text = text_hidden_states is not None
    if not have_video and not have_text:
        return None, None
    if have_video and target_video_hidden_states is None:
        raise ValueError("target_video_hidden_states is required when "
                         "video_hidden_states is given")

    H = prepared["hidden_size"]
    V = prepared["vocab_size"]
    nmf = non_masked_frame_hidden_states.astype(jnp.float32)   # (Nf, H)

    # Batch present streams into one row buffer: [video | text | zero-pad].
    rows = []
    Nv = 0
    if have_video:
        Nv = video_hidden_states.shape[0]
        rows.append(video_hidden_states.astype(jnp.float32))
    Nt = 0
    if have_text:
        Nt = text_hidden_states.shape[0]
        rows.append(text_hidden_states.astype(jnp.float32))
    x_all = rows[0] if len(rows) == 1 else jnp.concatenate(rows, axis=0)
    n_all = Nv + Nt
    Np = _round_up(max(n_all, 16), 16)           # bf16 sublane-friendly pad
    if Np > n_all:
        x_all = jnp.concatenate(
            [x_all, jnp.zeros((Np - n_all, H), jnp.float32)], axis=0)

    tgt_pad = jnp.zeros((Np, H), jnp.float32)
    if have_video:
        tgt_pad = lax.dynamic_update_slice(
            tgt_pad, target_video_hidden_states.astype(jnp.float32), (0, 0))

    # ---- kernel 1: transform + masked dot + non-masked-frame matmul ------ #
    h_bf16, masked, nm = _call_transform(
        x_all, tgt_pad, nmf,
        prepared["dense_w"], prepared["dense_b"],
        prepared["ln_g"], prepared["ln_b"])

    # ---- kernel 2: vocab-tiled projection, decoder weight streamed once -- #
    vocab_all = _call_project(h_bf16, prepared["decoder_w_bf16_pad"],
                              prepared["tile_v"],
                              prepared["vmem_limit_bytes"])

    # ---- assemble final PyTorch layouts (small-row-count concats only) --- #
    video_logits = None
    if have_video:
        video_logits = jnp.concatenate(
            [masked[:Nv], nm[:Nv], vocab_all[:Nv, :V]], axis=1)
    text_logits = None
    if have_text:
        text_logits = jnp.concatenate(
            [vocab_all[Nv:Nv + Nt, :V], nm[Nv:Nv + Nt]], axis=1)
    return video_logits, text_logits


# ------------------------- pure-JAX reference ------------------------------ #
def _ref_transform(x, dw, db, lg, lb):
    y = lax.dot_general(x, dw, (((1,), (1,)), ((), ())),
                        preferred_element_type=jnp.float32) + db
    y = 0.5 * y * (1.0 + lax.erf(y * INV_SQRT2))
    mu = jnp.mean(y, axis=-1, keepdims=True)
    var = jnp.mean((y - mu) ** 2, axis=-1, keepdims=True)
    y = (y - mu) * lax.rsqrt(var + LN_EPS)
    return y * lg + lb


def _ref_forward(params, vh, tgt, nmf, th):
    dw = params["dense_w"]
    db = params["dense_b"].reshape(1, -1)
    lg = params["ln_g"].reshape(1, -1)
    lb = params["ln_b"].reshape(1, -1)
    decw_b = params["decoder_w"].astype(jnp.bfloat16)
    dims = (((1,), (1,)), ((), ()))

    hv = _ref_transform(vh, dw, db, lg, lb)
    ht = _ref_transform(th, dw, db, lg, lb)

    masked = jnp.sum(hv * tgt, axis=-1, keepdims=True)
    nonmasked = lax.dot_general(hv, nmf, dims,
                                preferred_element_type=jnp.float32)
    vvocab = lax.dot_general(hv.astype(jnp.bfloat16), decw_b, dims,
                             preferred_element_type=jnp.float32)
    video_logits = jnp.concatenate([masked, nonmasked, vvocab], axis=1)

    tvocab = lax.dot_general(ht.astype(jnp.bfloat16), decw_b, dims,
                             preferred_element_type=jnp.float32)
    tvid = lax.dot_general(ht, nmf, dims,
                           preferred_element_type=jnp.float32)
    text_logits = jnp.concatenate([tvocab, tvid], axis=1)
    return video_logits, text_logits


if __name__ == "__main__":
    # Small shapes consistent with the module.
    H, V = 128, 504           # hidden_size, vocab_size
    Nv, Nf, Nt = 16, 7, 24    # masked frames, non-masked frames, text tokens

    key = jax.random.PRNGKey(0)
    ks = jax.random.split(key, 9)
    params = {
        "dense_w":   0.05 * jax.random.normal(ks[0], (H, H), jnp.float32),
        "dense_b":   0.05 * jax.random.normal(ks[1], (H,), jnp.float32),
        "ln_g":      1.0 + 0.05 * jax.random.normal(ks[2], (H,), jnp.float32),
        "ln_b":      0.05 * jax.random.normal(ks[3], (H,), jnp.float32),
        "decoder_w": 0.05 * jax.random.normal(ks[4], (V, H), jnp.float32),
    }
    video_hidden = jax.random.normal(ks[5], (Nv, H), jnp.float32)
    target_video = jax.random.normal(ks[6], (Nv, H), jnp.float32)
    non_masked = jax.random.normal(ks[7], (Nf, H), jnp.float32)
    text_hidden = jax.random.normal(ks[8], (Nt, H), jnp.float32)

    prepared = prepare_mtm_params(params)       # one-time weight prep

    video_logits, text_logits = mtm_head_forward(
        prepared,
        video_hidden_states=video_hidden,
        target_video_hidden_states=target_video,
        non_masked_frame_hidden_states=non_masked,
        text_hidden_states=text_hidden,
    )
    jax.block_until_ready((video_logits, text_logits))

    # correctness vs pure-JAX reference (bf16 decoder operands, f32 elsewhere)
    ref_v, ref_t = _ref_forward(params, video_hidden, target_video,
                                non_masked, text_hidden)
    assert video_logits.shape == (Nv, 1 + Nf + V)
    assert text_logits.shape == (Nt, V + Nf)
    assert jnp.allclose(video_logits, ref_v, atol=2e-2, rtol=2e-2)
    assert jnp.allclose(text_logits, ref_t, atol=2e-2, rtol=2e-2)

    print("KERNEL_OK")
</pallas_src>

<mosaic_0001>
module attributes {stable_mosaic.version = 11 : i64} {
  func.func @_transform_kernel(%arg0: i32, %arg1: memref<48x128xf32, #tpu.memory_space<vmem>>, %arg2: memref<48x128xf32, #tpu.memory_space<vmem>>, %arg3: memref<7x128xf32, #tpu.memory_space<vmem>>, %arg4: memref<128x128xf32, #tpu.memory_space<vmem>>, %arg5: memref<1x128xf32, #tpu.memory_space<vmem>>, %arg6: memref<1x128xf32, #tpu.memory_space<vmem>>, %arg7: memref<1x128xf32, #tpu.memory_space<vmem>>, %arg8: memref<48x128xbf16, #tpu.memory_space<vmem>>, %arg9: memref<48x1xf32, #tpu.memory_space<vmem>>, %arg10: memref<48x7xf32, #tpu.memory_space<vmem>>) attributes {dimension_semantics = [#tpu.dimension_semantics<arbitrary>], iteration_bounds = array<i64: 1>, scalar_prefetch = 0 : i64, scratch_operands = 0 : i64, tpu.core_type = #tpu.core_type<tc>, window_params = [{pipeline_mode = #tpu.pipeline_mode<synchronous>, transform_indices = @transform_0, window_bounds = array<i64: 48, 128>}, {pipeline_mode = #tpu.pipeline_mode<synchronous>, transform_indices = @transform_1, window_bounds = array<i64: 48, 128>}, {pipeline_mode = #tpu.pipeline_mode<synchronous>, transform_indices = @transform_2, window_bounds = array<i64: 7, 128>}, {pipeline_mode = #tpu.pipeline_mode<synchronous>, transform_indices = @transform_3, window_bounds = array<i64: 128, 128>}, {pipeline_mode = #tpu.pipeline_mode<synchronous>, transform_indices = @transform_4, window_bounds = array<i64: 1, 128>}, {pipeline_mode = #tpu.pipeline_mode<synchronous>, transform_indices = @transform_5, window_bounds = array<i64: 1, 128>}, {pipeline_mode = #tpu.pipeline_mode<synchronous>, transform_indices = @transform_6, window_bounds = array<i64: 1, 128>}, {pipeline_mode = #tpu.pipeline_mode<synchronous>, transform_indices = @transform_7, window_bounds = array<i64: 48, 128>}, {pipeline_mode = #tpu.pipeline_mode<synchronous>, transform_indices = @transform_8, window_bounds = array<i64: 48, 1>}, {pipeline_mode = #tpu.pipeline_mode<synchronous>, transform_indices = @transform_9, window_bounds = array<i64: 48, 7>}]} {
    %c0 = arith.constant 0 : index
    %c0_0 = arith.constant 0 : index
    %0 = vector.load %arg1[%c0, %c0_0] : memref<48x128xf32, #tpu.memory_space<vmem>>, vector<48x128xf32>
    %c0_1 = arith.constant 0 : index
    %c0_2 = arith.constant 0 : index
    %1 = vector.load %arg4[%c0_1, %c0_2] : memref<128x128xf32, #tpu.memory_space<vmem>>, vector<128x128xf32>
    %cst = arith.constant dense<0.000000e+00> : vector<48x128xf32>
    %2 = tpu.matmul %0, %1, %cst {dimension_numbers = #tpu.dot_dimension_numbers<[1], [1], [0], [0], [0, 0, 1, 0], [], []>} : vector<48x128xf32>, vector<128x128xf32>, vector<48x128xf32> -> vector<48x128xf32>
    %c0_3 = arith.constant 0 : index
    %c0_4 = arith.constant 0 : index
    %3 = vector.load %arg5[%c0_3, %c0_4] : memref<1x128xf32, #tpu.memory_space<vmem>>, vector<1x128xf32>
    %4 = vector.broadcast %3 : vector<1x128xf32> to vector<48x128xf32>
    %5 = arith.addf %2, %4 : vector<48x128xf32>
    %cst_5 = arith.constant 5.000000e-01 : f32
    %6 = vector.broadcast %cst_5 : f32 to vector<48x128xf32>
    %7 = arith.mulf %6, %5 : vector<48x128xf32>
    %cst_6 = arith.constant 0.707106769 : f32
    %8 = vector.broadcast %cst_6 : f32 to vector<48x128xf32>
    %9 = arith.mulf %5, %8 : vector<48x128xf32>
    %10 = math.erf %9 : vector<48x128xf32>
    %cst_7 = arith.constant 1.000000e+00 : f32
    %11 = vector.broadcast %cst_7 : f32 to vector<48x128xf32>
    %12 = arith.addf %11, %10 : vector<48x128xf32>
    %13 = arith.mulf %7, %12 : vector<48x128xf32>
    %cst_8 = arith.constant dense<0.000000e+00> : vector<48xf32>
    %14 = vector.multi_reduction <add>, %13, %cst_8 [1] : vector<48x128xf32> to vector<48xf32>
    %15 = vector.shape_cast %14 : vector<48xf32> to vector<48x1xf32>
    %cst_9 = arith.constant 1.280000e+02 : f32
    %16 = vector.broadcast %cst_9 : f32 to vector<48x1xf32>
    %17 = arith.divf %15, %16 : vector<48x1xf32>
    %18 = vector.broadcast %17 : vector<48x1xf32> to vector<48x128xf32>
    %19 = arith.subf %13, %18 : vector<48x128xf32>
    %20 = vector.broadcast %17 : vector<48x1xf32> to vector<48x128xf32>
    %21 = arith.subf %13, %20 : vector<48x128xf32>
    %22 = arith.mulf %19, %21 : vector<48x128xf32>
    %cst_10 = arith.constant dense<0.000000e+00> : vector<48xf32>
    %23 = vector.multi_reduction <add>, %22, %cst_10 [1] : vector<48x128xf32> to vector<48xf32>
    %24 = vector.shape_cast %23 : vector<48xf32> to vector<48x1xf32>
    %cst_11 = arith.constant 1.280000e+02 : f32
    %25 = vector.broadcast %cst_11 : f32 to vector<48x1xf32>
    %26 = arith.divf %24, %25 : vector<48x1xf32>
    %27 = vector.broadcast %17 : vector<48x1xf32> to vector<48x128xf32>
    %28 = arith.subf %13, %27 : vector<48x128xf32>
    %cst_12 = arith.constant 9.99999996E-13 : f32
    %29 = vector.broadcast %cst_12 : f32 to vector<48x1xf32>
    %30 = arith.addf %26, %29 : vector<48x1xf32>
    %31 = math.rsqrt %30 : vector<48x1xf32>
    %32 = vector.broadcast %31 : vector<48x1xf32> to vector<48x128xf32>
    %33 = arith.mulf %28, %32 : vector<48x128xf32>
    %c0_13 = arith.constant 0 : index
    %c0_14 = arith.constant 0 : index
    %34 = vector.load %arg6[%c0_13, %c0_14] : memref<1x128xf32, #tpu.memory_space<vmem>>, vector<1x128xf32>
    %35 = vector.broadcast %34 : vector<1x128xf32> to vector<48x128xf32>
    %36 = arith.mulf %33, %35 : vector<48x128xf32>
    %c0_15 = arith.constant 0 : index
    %c0_16 = arith.constant 0 : index
    %37 = vector.load %arg7[%c0_15, %c0_16] : memref<1x128xf32, #tpu.memory_space<vmem>>, vector<1x128xf32>
    %38 = vector.broadcast %37 : vector<1x128xf32> to vector<48x128xf32>
    %39 = arith.addf %36, %38 : vector<48x128xf32>
    %c0_17 = arith.constant 0 : index
    %c0_18 = arith.constant 0 : index
    %40 = vector.load %arg2[%c0_17, %c0_18] : memref<48x128xf32, #tpu.memory_space<vmem>>, vector<48x128xf32>
    %41 = arith.mulf %39, %40 : vector<48x128xf32>
    %cst_19 = arith.constant dense<0.000000e+00> : vector<48xf32>
    %42 = vector.multi_reduction <add>, %41, %cst_19 [1] : vector<48x128xf32> to vector<48xf32>
    %43 = vector.shape_cast %42 : vector<48xf32> to vector<48x1xf32>
    %c0_20 = arith.constant 0 : index
    %c0_21 = arith.constant 0 : index
    %44 = vector.load %arg9[%c0_20, %c0_21] : memref<48x1xf32, #tpu.memory_space<vmem>>, vector<48x1xf32>
    tpu.vector_store %arg9[%c0_20, %c0_21], %43 {strides = array<i32>} : memref<48x1xf32, #tpu.memory_space<vmem>>, vector<48x1xf32>,
    %c0_22 = arith.constant 0 : index
    %c0_23 = arith.constant 0 : index
    %45 = vector.load %arg3[%c0_22, %c0_23] : memref<7x128xf32, #tpu.memory_space<vmem>>, vector<7x128xf32>
    %cst_24 = arith.constant dense<0.000000e+00> : vector<48x7xf32>
    %46 = tpu.matmul %39, %45, %cst_24 {dimension_numbers = #tpu.dot_dimension_numbers<[1], [1], [0], [0], [0, 0, 1, 0], [], []>} : vector<48x128xf32>, vector<7x128xf32>, vector<48x7xf32> -> vector<48x7xf32>
    %c0_25 = arith.constant 0 : index
    %c0_26 = arith.constant 0 : index
    %47 = vector.load %arg10[%c0_25, %c0_26] : memref<48x7xf32, #tpu.memory_space<vmem>>, vector<48x7xf32>
    tpu.vector_store %arg10[%c0_25, %c0_26], %46 {strides = array<i32>} : memref<48x7xf32, #tpu.memory_space<vmem>>, vector<48x7xf32>,
    %48 = arith.truncf %39 : vector<48x128xf32> to vector<48x128xbf16>
    %c0_27 = arith.constant 0 : index
    %c0_28 = arith.constant 0 : index
    %49 = vector.load %arg8[%c0_27, %c0_28] : memref<48x128xbf16, #tpu.memory_space<vmem>>, vector<48x128xbf16>
    tpu.vector_store %arg8[%c0_27, %c0_28], %48 {strides = array<i32>} : memref<48x128xbf16, #tpu.memory_space<vmem>>, vector<48x128xbf16>,
    return
  }
  func.func @transform_0(%arg0: i32) -> (i32, i32) {
    %c0_i32 = arith.constant 0 : i32
    %c0_i32_0 = arith.constant 0 : i32
    %c0_i32_1 = arith.constant 0 : i32
    return %c0_i32, %c0_i32_0 : i32, i32
  }
  func.func @transform_1(%arg0: i32) -> (i32, i32) {
    %c0_i32 = arith.constant 0 : i32
    %c0_i32_0 = arith.constant 0 : i32
    %c0_i32_1 = arith.constant 0 : i32
    return %c0_i32, %c0_i32_0 : i32, i32
  }
  func.func @transform_2(%arg0: i32) -> (i32, i32) {
    %c0_i32 = arith.constant 0 : i32
    %c0_i32_0 = arith.constant 0 : i32
    %c0_i32_1 = arith.constant 0 : i32
    return %c0_i32, %c0_i32_0 : i32, i32
  }
  func.func @transform_3(%arg0: i32) -> (i32, i32) {
    %c0_i32 = arith.constant 0 : i32
    %c0_i32_0 = arith.constant 0 : i32
    %c0_i32_1 = arith.constant 0 : i32
    return %c0_i32, %c0_i32_0 : i32, i32
  }
  func.func @transform_4(%arg0: i32) -> (i32, i32) {
    %c0_i32 = arith.constant 0 : i32
    %c0_i32_0 = arith.constant 0 : i32
    %c0_i32_1 = arith.constant 0 : i32
    return %c0_i32, %c0_i32_0 : i32, i32
  }
  func.func @transform_5(%arg0: i32) -> (i32, i32) {
    %c0_i32 = arith.constant 0 : i32
    %c0_i32_0 = arith.constant 0 : i32
    %c0_i32_1 = arith.constant 0 : i32
    return %c0_i32, %c0_i32_0 : i32, i32
  }
  func.func @transform_6(%arg0: i32) -> (i32, i32) {
    %c0_i32 = arith.constant 0 : i32
    %c0_i32_0 = arith.constant 0 : i32
    %c0_i32_1 = arith.constant 0 : i32
    return %c0_i32, %c0_i32_0 : i32, i32
  }
  func.func @transform_7(%arg0: i32) -> (i32, i32) {
    %c0_i32 = arith.constant 0 : i32
    %c0_i32_0 = arith.constant 0 : i32
    %c0_i32_1 = arith.constant 0 : i32
    return %c0_i32, %c0_i32_0 : i32, i32
  }
  func.func @transform_8(%arg0: i32) -> (i32, i32) {
    %c0_i32 = arith.constant 0 : i32
    %c0_i32_0 = arith.constant 0 : i32
    %c0_i32_1 = arith.constant 0 : i32
    return %c0_i32, %c0_i32_0 : i32, i32
  }
  func.func @transform_9(%arg0: i32) -> (i32, i32) {
    %c0_i32 = arith.constant 0 : i32
    %c0_i32_0 = arith.constant 0 : i32
    %c0_i32_1 = arith.constant 0 : i32
    return %c0_i32, %c0_i32_0 : i32, i32
  }
}

</mosaic_0001>

<bundles_post_ra>
// kernel: tpu_custom_call.1
= control target key start
LH: loop header
LB: loop body
LE: loop exit
PB: predicated region body
PF: predicated region fallthrough
CT: control target
= control target key end

     0   :  { %15 = vsyncpa [#allocation3], 0  ;;  %s908_s0 = inlined_call_operand.hbm [shape: f32[48,128], index: 0, kind: input, shape index: {}]   ;;  %s909_s1 = inlined_call_operand.hbm [shape: f32[48,128], index: 1, kind: input, shape index: {}]   ;;  %s910_s2 = inlined_call_operand.hbm [shape: f32[7,128], index: 2, kind: input, shape index: {}]   ;;  %s911_s3 = inlined_call_operand.hbm [shape: f32[128,128], index: 3, kind: input, shape index: {}]   ;;  %s912_s4 = inlined_call_operand.vmem [shape: f32[1,128], index: 4, kind: input, shape index: {}]   ;;  %s913_s5 = inlined_call_operand.vmem [shape: f32[1,128], index: 5, kind: input, shape index: {}]   ;;  %s914_s6 = inlined_call_operand.vmem [shape: f32[1,128], index: 6, kind: input, shape index: {}]   ;;  %s915_s7 = inlined_call_operand.hbm [shape: bf16[48,128], index: 7, kind: output, shape index: {0}]   ;;  %s916_s8 = inlined_call_operand.vmem [shape: f32[48,1], index: 8, kind: output, shape index: {1}]   ;;  %s917_s9 = inlined_call_operand.vmem [shape: f32[48,7], index: 9, kind: output, shape index: {2}]  }
   0x1   :  { %16 = vsyncpa [#allocation6], 0 }
   0x2   :  { %17 = vsyncpa [#allocation9], 0 }
   0x3   :  { %18 = vsyncpa [#allocation4], 0  ;;  %s775_s30 = smov [#allocation5]   ;;  %s776_s11 = smov [#allocation2]  }
   0x4   :  { %s36_s10 = sshll.u32 %s775_s30, 4  ;;  %s24_s12 = sshll.u32 %s776_s11, 4  ;;  %s37_s10 = int_to_ptr.vmem [resolvable:$true] %s36_s10  ;;  %s25_s12 = int_to_ptr.vmem [resolvable:$true] %s24_s12 }
   0x5   :  { %s675_s13 = scalar_lea.vmem %s37_s10, 768  ;;  %p680_p1 = scmp.lt.s32.totalorder %s37_s10, %s37_s10 }
   0x6   :  { %p676_p0 = scmp.ne.s32.totalorder %s37_s10, %s675_s13  ;;  %p681_p2 = scmp.lt.s32.totalorder %s675_s13, %s675_s13 }
   0x8   :  { %p682_p3 = por %p681_p2, %p680_p1 }
   0xa   :  { %p683_p4 = pnand %p682_p3, %p676_p0 }
   0xc   :  { %686 = shalt.err (!%p683_p4)
}
   0xd   :  { %s777_s14 = smov 128   ;;  %s778_s15 = smov 8  }
   0xe   :  { %42 = dma.hbm_to_vmem [thread:$0]  %s909_s1, 768, %s37_s10, [#allocation6], %s777_s14, %s777_s14, %s778_s15  }
   0xf   :  { %s695_s18 = scalar_lea.vmem %s25_s12, 768  ;;  %p700_p6 = scmp.lt.s32.totalorder %s25_s12, %s25_s12 }
  0x10   :  { %p696_p5 = scmp.ne.s32.totalorder %s25_s12, %s695_s18  ;;  %p701_p7 = scmp.lt.s32.totalorder %s695_s18, %s695_s18 }
  0x12   :  { %p702_p8 = por %p701_p7, %p700_p6 }
  0x14   :  { %p703_p9 = pnand %p702_p8, %p696_p5 }
  0x16   :  { %706 = shalt.err (!%p703_p9)
}
  0x17   :  { %30 = dma.hbm_to_vmem [thread:$0]  %s908_s0, 768, %s25_s12, [#allocation3], %s777_s14, %s777_s14, %s778_s15  }
  0x18   :  { %s779_s21 = smov [#allocation7]   ;;  %s780_s23 = smov [#allocation8]  }
  0x19   :  { %s49_s22 = sshll.u32 %s779_s21, 4  ;;  %s58_s24 = sshll.u32 %s780_s23, 4  ;;  %s50_s22 = int_to_ptr.vmem [resolvable:$true] %s49_s22  ;;  %s59_s24 = int_to_ptr.vmem [resolvable:$true] %s58_s24 }
  0x1a   :  { %s715_s1 = scalar_lea.vmem %s50_s22, 128  ;;  %p720_p11 = scmp.lt.s32.totalorder %s50_s22, %s50_s22 }
  0x1b   :  { %p716_p10 = scmp.ne.s32.totalorder %s50_s22, %s715_s1  ;;  %p721_p12 = scmp.lt.s32.totalorder %s715_s1, %s715_s1 }
  0x1d   :  { %p722_p13 = por %p721_p12, %p720_p11 }
  0x1f   :  { %p723_p0 = pnand %p722_p13, %p716_p10 }
  0x21   :  { %726 = shalt.err (!%p723_p0)
}
  0x22   :  { %52 = dma.hbm_to_vmem [thread:$0]  %s910_s2, 128, %s50_s22, [#allocation6]  }
  0x23   :  { %s735_s27 = scalar_lea.vmem %s59_s24, 2048  ;;  %p740_p2 = scmp.lt.s32.totalorder %s59_s24, %s59_s24 }
  0x24   :  { %p736_p1 = scmp.ne.s32.totalorder %s59_s24, %s735_s27  ;;  %p741_p3 = scmp.lt.s32.totalorder %s735_s27, %s735_s27 }
  0x26   :  { %p742_p4 = por %p741_p3, %p740_p2 }
  0x28   :  { %p743_p5 = pnand %p742_p4, %p736_p1 }
  0x2a   :  { %746 = shalt.err (!%p743_p5)
}
  0x2b   :  { %64 = dma.hbm_to_vmem [thread:$0]  %s911_s3, 2048, %s59_s24, [#allocation9], %s777_s14, %s777_s14, %s778_s15  }
  0x2c   :  { %767 = dma.done.wait [#allocation3], 768  }
  0x2d   :  { %768 = vsyncadd [#allocation3], 4294966528 }
  0x2e   :  { %769 = dma.done.wait [#allocation6], 896  }
  0x2f   :  { %770 = vsyncadd [#allocation6], 4294966400 }
  0x30   :  { %771 = dma.done.wait [#allocation9], 2048  }
  0x31   :  { %772 = vsyncadd [#allocation9], 4294965248  ;;  %v104_v0 = vld [vmem:[#allocation8 + $0x78] sm:$0xff]  ;;  %v103_v1 = vld [vmem:[#allocation8 + $0x70] sm:$0xff] }
  0x32   :  { %582 = vmatprep.subr.mxu0 %v104_v0  ;;  %v102_v2 = vld [vmem:[#allocation8 + $0x68] sm:$0xff]  ;;  %v83_v3 = vld [vmem:[#allocation2] sm:$0xff]  ;;  %v101_v4 = vld [vmem:[#allocation8 + $0x60] sm:$0xff] }
  0x33   :  { %583 = vmatpush3.xpose.msra.mxu0 %v104_v0  ;;  %614 = vmatprep.mubr.f32.mxu0 %v83_v3  ;;  %v100_v5 = vld [vmem:[#allocation8 + $0x58] sm:$0xff]  ;;  %v99_v6 = vld [vmem:[#allocation8 + $0x50] sm:$0xff]  ;;  %v98_v7 = vld [vmem:[#allocation8 + $0x48] sm:$0xff] }
  0x34   :  { %584 = vmatprep.subr.mxu0 %v103_v1  ;;  %v97_v8 = vld [vmem:[#allocation8 + $0x40] sm:$0xff]  ;;  %v96_v9 = vld [vmem:[#allocation8 + $0x38] sm:$0xff]  ;;  %v95_v10 = vld [vmem:[#allocation8 + $0x30] sm:$0xff] }
  0x35   :  { %v94_v11 = vld [vmem:[#allocation8 + $0x28] sm:$0xff]  ;;  %v93_v12 = vld [vmem:[#allocation8 + $0x20] sm:$0xff]  ;;  %v92_v13 = vld [vmem:[#allocation8 + $0x18] sm:$0xff] }
  0x36   :  { %v91_v14 = vld [vmem:[#allocation8 + $0x10] sm:$0xff]  ;;  %v90_v15 = vld [vmem:[#allocation8 + $0x8] sm:$0xff]  ;;  %v89_v16 = vld [vmem:[#allocation8] sm:$0xff] }
  0x37   :  { %585 = vmatpush3.xpose.msra.mxu0 %v103_v1  ;;  %v84_v17 = vld [vmem:[#allocation2 + $0x8] sm:$0xff]  ;;  %v85_v18 = vld [vmem:[#allocation2 + $0x10] sm:$0xff]  ;;  %v86_v19 = vld [vmem:[#allocation2 + $0x18] sm:$0xff] }
  0x38   :  { %586 = vmatprep.subr.mxu0 %v102_v2  ;;  %v87_v20 = vld [vmem:[#allocation2 + $0x20] sm:$0xff]  ;;  %v88_v21 = vld [vmem:[#allocation2 + $0x28] sm:$0xff] }
  0x39   :  { %v521_v22 = vld [vmem:[%s912_s4] ss:$0 sm:$0xff] }
  0x3b   :  { %587 = vmatpush3.xpose.msra.mxu0 %v102_v2 }
  0x3c   :  { %588 = vmatprep.subr.mxu0 %v101_v4 }
  0x3f   :  { %589 = vmatpush3.xpose.msra.mxu0 %v101_v4 }
  0x40   :  { %590 = vmatprep.subr.mxu0 %v100_v5 }
  0x43   :  { %591 = vmatpush3.xpose.msra.mxu0 %v100_v5 }
  0x44   :  { %592 = vmatprep.subr.mxu0 %v99_v6 }
  0x47   :  { %593 = vmatpush3.xpose.msra.mxu0 %v99_v6 }
  0x48   :  { %594 = vmatprep.subr.mxu0 %v98_v7 }
  0x4b   :  { %595 = vmatpush3.xpose.msra.mxu0 %v98_v7 }
  0x4c   :  { %596 = vmatprep.subr.mxu0 %v97_v8 }
  0x4f   :  { %597 = vmatpush3.xpose.msra.mxu0 %v97_v8 }
  0x50   :  { %598 = vmatprep.subr.mxu0 %v96_v9 }
  0x53   :  { %599 = vmatpush3.xpose.msra.mxu0 %v96_v9 }
  0x54   :  { %600 = vmatprep.subr.mxu0 %v95_v10 }
  0x57   :  { %601 = vmatpush3.xpose.msra.mxu0 %v95_v10 }
  0x58   :  { %602 = vmatprep.subr.mxu0 %v94_v11 }
  0x5b   :  { %603 = vmatpush3.xpose.msra.mxu0 %v94_v11 }
  0x5c   :  { %604 = vmatprep.subr.mxu0 %v93_v12 }
  0x5f   :  { %605 = vmatpush3.xpose.msra.mxu0 %v93_v12 }
  0x60   :  { %606 = vmatprep.subr.mxu0 %v92_v13 }
  0x63   :  { %607 = vmatpush3.xpose.msra.mxu0 %v92_v13 }
  0x64   :  { %608 = vmatprep.subr.mxu0 %v91_v14 }
  0x67   :  { %609 = vmatpush3.xpose.msra.mxu0 %v91_v14 }
  0x68   :  { %610 = vmatprep.subr.mxu0 %v90_v15 }
  0x6b   :  { %611 = vmatpush3.xpose.msra.mxu0 %v90_v15 }
  0x6c   :  { %612 = vmatprep.subr.mxu0 %v89_v16 }
  0x6f   :  { %613 = vmatpush3.xpose.msra.mxu0 %v89_v16 }
  0x72   :  { %615 = vmatmul.mubr.f32.vlgmr.msra.gmra.mxu0 %v84_v17 }
  0x73   :  { %617 = vmatprep.mubr.f32.mxu0 %v85_v18 }
  0x76   :  { %618 = vmatmul.mubr.f32.gmra.mxu0 %v86_v19 }
  0x77   :  { %620 = vmatprep.mubr.f32.mxu0 %v87_v20 }
  0x7a   :  { %621 = vmatmul.mubr.f32.gmra.mxu0 %v88_v21 }
 0x132   :  { %v616_v23 = vpop.f32.mrf.mxu0 }
 0x133   :  { %v184_v24 = vadd.f32 %v616_v23, %v521_v22 }
 0x134   :  { %v178_v25 = vpop.f32.mrf.mxu0 }
 0x135   :  { %v214_v26 = vmul.f32 0.70710677, %v184_v24  ;;  %v179_v27 = vadd.f32 %v521_v22, %v178_v25  ;;  %v208_v49 = vmul.f32 0.5, %v184_v24  ;;  %v361_v25 = vld [vmem:[#allocation7] sm:$0x7f] }
 0x136   :  { %v619_v28 = vpop.f32.mrf.mxu0  ;;  %623 = vmatprep.subr.mxu1 %v361_v25 }
 0x137   :  { %v213_v29 = vmul.f32 0.70710677, %v179_v27  ;;  %v194_v30 = vadd.f32 %v619_v28, %v521_v22  ;;  %643 = verf.f32 %v214_v26  ;;  %v207_v43 = vmul.f32 0.5, %v179_v27  ;;  %624 = vmatpush3.xpose.msra.mxu1 %v361_v25 }
 0x138   :  { %v188_v31 = vpop.f32.mrf.mxu0 }
 0x139   :  { %645 = verf.f32 %v213_v29  ;;  %v216_v32 = vmul.f32 0.70710677, %v194_v30  ;;  %v189_v33 = vadd.f32 %v521_v22, %v188_v31  ;;  %v210_v57 = vmul.f32 0.5, %v194_v30 }
 0x13a   :  { %v622_v34 = vpop.f32.mrf.mxu0 }
 0x13b   :  { %v215_v35 = vmul.f32 0.70710677, %v189_v33  ;;  %v204_v36 = vadd.f32 %v622_v34, %v521_v22  ;;  %647 = verf.f32 %v216_v32  ;;  %v209_v50 = vmul.f32 0.5, %v189_v33 }
 0x13c   :  { %v198_v37 = vpop.f32.mrf.mxu0 }
 0x13d   :  { %649 = verf.f32 %v215_v35  ;;  %v218_v38 = vmul.f32 0.70710677, %v204_v36  ;;  %v199_v39 = vadd.f32 %v521_v22, %v198_v37  ;;  %v212_v63 = vmul.f32 0.5, %v204_v36 }
 0x13f   :  { %v217_v40 = vmul.f32 0.70710677, %v199_v39  ;;  %651 = verf.f32 %v218_v38  ;;  %v211_v58 = vmul.f32 0.5, %v199_v39 }
 0x141   :  { %653 = verf.f32 %v217_v40 }
 0x144   :  { %v644_v41 = vpop.eup %643 }
 0x145   :  { %v226_v47 = vadd.f32 1.0, %v644_v41 }
 0x146   :  { %v646_v42 = vpop.eup %645 }
 0x147   :  { %v225_v44 = vadd.f32 1.0, %v646_v42  ;;  %v232_v54 = vmul.f32 %v226_v47, %v208_v49  ;;  %v523_v47 = vld [vmem:[%s914_s6] ss:$0 sm:$0xff] }
 0x148   :  { %v648_v45 = vpop.eup %647 }
 0x149   :  { %v231_v46 = vmul.f32 %v225_v44, %v207_v43  ;;  %v228_v55 = vadd.f32 1.0, %v648_v45  ;;  %v522_v45 = vld [vmem:[%s913_s5] ss:$0 sm:$0xff]  ;;  %s781_s5 = smov [#allocation10]  }
 0x14a   :  { %v650_v48 = vpop.eup %649  ;;  %s499_s6 = sshll.u32 %s781_s5, 4  ;;  %s500_s6 = int_to_ptr.vmem [resolvable:$true] %s499_s6 }
 0x14b   :  { %237 = vadd.xlane.f32.xlu0 %v231_v46  ;;  %v227_v51 = vadd.f32 1.0, %v650_v48  ;;  %v234_v60 = vmul.f32 %v228_v55, %v210_v57  ;;  %s747_s11 = scalar_lea.vmem %s500_s6, 384  ;;  %p752_p7 = scmp.lt.s32.totalorder %s500_s6, %s500_s6 }
 0x14c   :  { %v652_v52 = vpop.eup %651  ;;  %p748_p6 = scmp.ne.s32.totalorder %s500_s6, %s747_s11  ;;  %p753_p8 = scmp.lt.s32.totalorder %s747_s11, %s747_s11 }
 0x14d   :  { %v233_v53 = vmul.f32 %v227_v51, %v209_v50  ;;  %v230_v62 = vadd.f32 1.0, %v652_v52  ;;  %v330_v50 = vld [vmem:[#allocation5] sm:$0xff] }
 0x14e   :  { %v654_v56 = vpop.eup %653  ;;  %p754_p9 = por %p753_p8, %p752_p7 }
 0x14f   :  { %241 = vadd.xlane.f32.xlu1 %v233_v53  ;;  %239 = vadd.xlane.f32.xlu0 %v232_v54  ;;  %v229_v59 = vadd.f32 1.0, %v654_v56  ;;  %v236_v0 = vmul.f32 %v230_v62, %v212_v63  ;;  %v332_v62 = vld [vmem:[#allocation5 + $0x10] sm:$0xff] }
 0x150   :  { %p755_p10 = pnand %p754_p9, %p748_p6 }
 0x151   :  { %v235_v61 = vmul.f32 %v229_v59, %v211_v58  ;;  %v331_v59 = vld [vmem:[#allocation5 + $0x8] sm:$0xff] }
 0x153   :  { %243 = vadd.xlane.f32.xlu1 %v234_v60  ;;  %245 = vadd.xlane.f32.xlu0 %v235_v61 }
 0x157   :  { %247 = vadd.xlane.f32.xlu1 %v236_v0 }
 0x1d4   :  { %v238_v1 = vpop.xlane.xlu0 %237 }
 0x1d5   :  { %v250_v2 = vmul.f32 0.0078125, %v238_v1 }
 0x1d7   :  { %v256_v3 = vsub.f32 %v231_v46, %v250_v2 }
 0x1d8   :  { %v242_v4 = vpop.xlane.xlu1 %241  ;;  %v240_v5 = vpop.xlane.xlu0 %239 }
 0x1d9   :  { %v252_v6 = vmul.f32 0.0078125, %v242_v4  ;;  %v251_v7 = vmul.f32 0.0078125, %v240_v5  ;;  %v262_v8 = vmul.f32 %v256_v3, %v256_v3 }
 0x1db   :  { %v258_v9 = vsub.f32 %v233_v53, %v252_v6  ;;  %v257_v10 = vsub.f32 %v232_v54, %v251_v7  ;;  %268 = vadd.xlane.f32.xlu0 %v262_v8  ;;  %v333_v8 = vld [vmem:[#allocation5 + $0x18] sm:$0xff] }
 0x1dc   :  { %v244_v11 = vpop.xlane.xlu1 %243  ;;  %v246_v12 = vpop.xlane.xlu0 %245 }
 0x1dd   :  { %v253_v13 = vmul.f32 0.0078125, %v244_v11  ;;  %v254_v14 = vmul.f32 0.0078125, %v246_v12  ;;  %v264_v15 = vmul.f32 %v258_v9, %v258_v9  ;;  %v263_v16 = vmul.f32 %v257_v10, %v257_v10 }
 0x1df   :  { %v259_v17 = vsub.f32 %v234_v60, %v253_v13  ;;  %v260_v18 = vsub.f32 %v235_v61, %v254_v14  ;;  %272 = vadd.xlane.f32.xlu0 %v264_v15  ;;  %270 = vadd.xlane.f32.xlu1 %v263_v16 }
 0x1e0   :  { %v248_v19 = vpop.xlane.xlu1 %247 }
 0x1e1   :  { %v255_v20 = vmul.f32 0.0078125, %v248_v19  ;;  %v265_v21 = vmul.f32 %v259_v17, %v259_v17  ;;  %v266_v22 = vmul.f32 %v260_v18, %v260_v18 }
 0x1e3   :  { %v858_v23 = vsub.f32 %v236_v0, %v255_v20  ;;  %274 = vadd.xlane.f32.xlu1 %v265_v21  ;;  %276 = vadd.xlane.f32.xlu0 %v266_v22 }
 0x1e5   :  { %v267_v24 = vmul.f32 %v858_v23, %v858_v23 }
 0x1e7   :  { %278 = vadd.xlane.f32.xlu1 %v267_v24 }
 0x264   :  { %v269_v26 = vpop.xlane.xlu0 %268 }
 0x265   :  { %v280_v27 = vmul.f32 0.0078125, %v269_v26 }
 0x267   :  { %v286_v28 = vadd.f32 1e-12, %v280_v27 }
 0x268   :  { %v271_v29 = vpop.xlane.xlu1 %270  ;;  %v273_v30 = vpop.xlane.xlu0 %272 }
 0x269   :  { %655 = vrsqrt.f32 %v286_v28  ;;  %v281_v31 = vmul.f32 0.0078125, %v271_v29  ;;  %v282_v32 = vmul.f32 0.0078125, %v273_v30 }
 0x26b   :  { %v287_v33 = vadd.f32 1e-12, %v281_v31  ;;  %v288_v34 = vadd.f32 1e-12, %v282_v32 }
 0x26c   :  { %v275_v35 = vpop.xlane.xlu1 %274  ;;  %v277_v36 = vpop.xlane.xlu0 %276 }
 0x26d   :  { %657 = vrsqrt.f32 %v287_v33  ;;  %v283_v37 = vmul.f32 0.0078125, %v275_v35  ;;  %v284_v38 = vmul.f32 0.0078125, %v277_v36 }
 0x26e   :  { %659 = vrsqrt.f32 %v288_v34 }
 0x26f   :  { %v289_v39 = vadd.f32 1e-12, %v283_v37  ;;  %v290_v40 = vadd.f32 1e-12, %v284_v38 }
 0x270   :  { %v279_v41 = vpop.xlane.xlu1 %278 }
 0x271   :  { %661 = vrsqrt.f32 %v289_v39  ;;  %v285_v42 = vmul.f32 0.0078125, %v279_v41 }
 0x272   :  { %663 = vrsqrt.f32 %v290_v40 }
 0x273   :  { %v291_v43 = vadd.f32 1e-12, %v285_v42 }
 0x275   :  { %665 = vrsqrt.f32 %v291_v43 }
 0x276   :  { %v656_v44 = vpop.eup %655 }
 0x277   :  { %v298_v46 = vmul.f32 %v656_v44, %v256_v3 }
 0x279   :  { %v311_v48 = vmul.f32 %v522_v45, %v298_v46 }
 0x27a   :  { %v658_v49 = vpop.eup %657 }
 0x27b   :  { %v660_v51 = vpop.eup %659  ;;  %v324_v52 = vadd.f32 %v523_v47, %v311_v48  ;;  %v299_v53 = vmul.f32 %v658_v49, %v257_v10  ;;  %v334_v10 = vld [vmem:[#allocation5 + $0x20] sm:$0xff] }
 0x27c   :  { %v300_v54 = vmul.f32 %v660_v51, %v258_v9 }
 0x27d   :  { %625 = vmatprep.mubr.f32.mxu1 %v324_v52  ;;  %v336_v55 = vmul.f32 %v330_v50, %v324_v52  ;;  %v312_v56 = vmul.f32 %v522_v45, %v299_v53 }
 0x27e   :  { %v662_v57 = vpop.eup %661  ;;  %v313_v58 = vmul.f32 %v522_v45, %v300_v54 }
 0x27f   :  { %v664_v60 = vpop.eup %663  ;;  %342 = vadd.xlane.f32.xlu0 %v336_v55  ;;  %v325_v61 = vadd.f32 %v523_v47, %v312_v56  ;;  %v301_v63 = vmul.f32 %v662_v57, %v259_v17  ;;  %v335_v17 = vld [vmem:[#allocation5 + $0x28] sm:$0xff] }
 0x280   :  { %v326_v0 = vadd.f32 %v523_v47, %v313_v58  ;;  %v302_v1 = vmul.f32 %v664_v60, %v260_v18 }
 0x281   :  { %626 = vmatmul.mubr.f32.vlgmr.msra.gmra.mxu1 %v325_v61  ;;  %v539_v2 = vpack.c.bf16 %v325_v61, %v324_v52  ;;  %v337_v3 = vmul.f32 %v331_v59, %v325_v61  ;;  %v314_v4 = vmul.f32 %v522_v45, %v301_v63 }
 0x282   :  { %v666_v5 = vpop.eup %665  ;;  %628 = vmatprep.mubr.f32.mxu1 %v326_v0  ;;  %v338_v6 = vmul.f32 %v332_v62, %v326_v0  ;;  %v315_v7 = vmul.f32 %v522_v45, %v302_v1 }
 0x283   :  { %540 = vst [vmem:[#allocation10] sm:$0xff] %v539_v2   ;;  %344 = vadd.xlane.f32.xlu1 %v337_v3  ;;  %v327_v9 = vadd.f32 %v523_v47, %v314_v4  ;;  %v303_v11 = vmul.f32 %v666_v5, %v858_v23 }
 0x284   :  { %346 = vadd.xlane.f32.xlu0 %v338_v6  ;;  %v328_v12 = vadd.f32 %v523_v47, %v315_v7 }
 0x285   :  { %629 = vmatmul.mubr.f32.gmra.mxu1 %v327_v9  ;;  %v544_v13 = vpack.c.bf16 %v327_v9, %v326_v0  ;;  %v339_v14 = vmul.f32 %v333_v8, %v327_v9  ;;  %v316_v15 = vmul.f32 %v522_v45, %v303_v11 }
 0x286   :  { %631 = vmatprep.mubr.f32.mxu1 %v328_v12  ;;  %v340_v16 = vmul.f32 %v334_v10, %v328_v12 }
 0x287   :  { %551 = vst [vmem:[#allocation10 + $0x8] sm:$0xff] %v544_v13   ;;  %348 = vadd.xlane.f32.xlu1 %v339_v14  ;;  %v329_v18 = vadd.f32 %v523_v47, %v316_v15 }
 0x288   :  { %350 = vadd.xlane.f32.xlu0 %v340_v16 }
 0x289   :  { %632 = vmatmul.mubr.f32.gmra.mxu1 %v329_v18  ;;  %v549_v19 = vpack.c.bf16 %v329_v18, %v328_v12  ;;  %v341_v20 = vmul.f32 %v335_v17, %v329_v18 }
 0x28b   :  { %552 = vst [vmem:[#allocation10 + $0x10] sm:$0xff] %v549_v19   ;;  %352 = vadd.xlane.f32.xlu1 %v341_v20 }
 0x28c   :  { %758 = shalt.err (!%p755_p10)
}
 0x28d   :  { %s782_s12 = smov 64   ;;  %s783_s13 = smov 4   ;;  %vm354_vm0 = vcmask 7168   ;;  %vm457_vm1 = vcmask 56320  }
 0x28e   :  { %505 = dma.vmem_to_hbm [thread:$0]  %s500_s6, 384, %s915_s7, [#allocation4], %s782_s12, %s782_s12, %s783_s13  }
 0x308   :  { %v343_v21 = vpop.xlane.xlu0 %342 }
 0x309   :  { %355 = vst.msk [vmem:[%s916_s8] sm:$0xff] %vm354_vm0, %v343_v21 }
 0x30c   :  { %v345_v22 = vpop.xlane.xlu1 %344 }
 0x30d   :  { %356 = vst.msk [vmem:[%s916_s8 + $0x8] sm:$0xff] %vm354_vm0, %v345_v22  ;;  %v347_v23 = vpop.xlane.xlu0 %346 }
 0x30e   :  { %357 = vst.msk [vmem:[%s916_s8 + $0x10] sm:$0xff] %vm354_vm0, %v347_v23 }
 0x310   :  { %v349_v24 = vpop.xlane.xlu1 %348 }
 0x311   :  { %358 = vst.msk [vmem:[%s916_s8 + $0x18] sm:$0xff] %vm354_vm0, %v349_v24  ;;  %v351_v25 = vpop.xlane.xlu0 %350 }
 0x312   :  { %359 = vst.msk [vmem:[%s916_s8 + $0x20] sm:$0xff] %vm354_vm0, %v351_v25 }
 0x314   :  { %v353_v26 = vpop.xlane.xlu1 %352 }
 0x315   :  { %360 = vst.msk [vmem:[%s916_s8 + $0x28] sm:$0xff] %vm354_vm0, %v353_v26 }
 0x341   :  { %v627_v27 = vpop.f32.mrf.mxu1 }
 0x342   :  { %459 = vst.msk [vmem:[%s917_s9 + $0x8] sm:$0xff] %vm457_vm1, %v627_v27 }
 0x343   :  { %v428_v28 = vpop.f32.mrf.mxu1 }
 0x344   :  { %458 = vst.msk [vmem:[%s917_s9] sm:$0xff] %vm457_vm1, %v428_v28 }
 0x345   :  { %v630_v29 = vpop.f32.mrf.mxu1 }
 0x346   :  { %461 = vst.msk [vmem:[%s917_s9 + $0x18] sm:$0xff] %vm457_vm1, %v630_v29 }
 0x347   :  { %v438_v30 = vpop.f32.mrf.mxu1 }
 0x348   :  { %460 = vst.msk [vmem:[%s917_s9 + $0x10] sm:$0xff] %vm457_vm1, %v438_v30 }
 0x349   :  { %v633_v31 = vpop.f32.mrf.mxu1 }
 0x34a   :  { %463 = vst.msk [vmem:[%s917_s9 + $0x28] sm:$0xff] %vm457_vm1, %v633_v31 }
 0x34b   :  { %v448_v32 = vpop.f32.mrf.mxu1 }
 0x34c   :  { %462 = vst.msk [vmem:[%s917_s9 + $0x20] sm:$0xff] %vm457_vm1, %v448_v32 }
 0x34d   :  { %773 = dma.done.wait [#allocation4], 384  }
 0x34e   :  { %774 = vsyncadd [#allocation4], 4294966912 }
 0x34f   :  { %517 = vsyncpa [#allocation3], 1 }
 0x350   :  { %518 = vsyncpa [#allocation6], 1 }
 0x351   :  { %519 = vsyncpa [#allocation9], 1 }
 0x352   :  { %520 = vsyncpa [#allocation4], 1 }

</bundles_post_ra>
